<compile_context>
chip_gen: v5e
topology: v5e:2x2
jax: 0.10.0
libtpu: 0.0.40
codegen_flags: <defaults>
</compile_context>

<pallas_src>
import jax
import jax.numpy as jnp
from jax.experimental import pallas as pl
from jax.experimental.pallas import tpu as pltpu


def _make_channel_attention_kernel(C, HW_valid, HW_pad, hidden, Bb, out_dtype):
    inv_hw = 1.0 / float(HW_valid)
    needs_mask = HW_pad != HW_valid

    def kernel(x_ref, w1t_ref, w2t_ref, out_ref):
        x = x_ref[...]                               # (Bb, C, HW_pad), native dtype
        xf = x.astype(jnp.float32)                   # pool / accumulate in f32

        # AdaptiveMaxPool2d(1) / AdaptiveAvgPool2d(1): reductions over the lane axis.
        if needs_mask:
            lane = jax.lax.broadcasted_iota(jnp.int32, xf.shape, 2)
            mx = jnp.max(jnp.where(lane < HW_valid, xf, -jnp.inf), axis=-1)   # (Bb, C)
        else:
            mx = jnp.max(xf, axis=-1)                                         # (Bb, C)
        avg = jnp.sum(xf, axis=-1) * inv_hw                                   # (Bb, C); zero pad adds 0

        w1t = w1t_ref[...].astype(jnp.float32)       # (C, hidden)
        w2t = w2t_ref[...].astype(jnp.float32)       # (hidden, C)

        # fc(max) + fc(avg); second 1x1 conv is linear, so sum the ReLU'd hidden activations.
        h = (jnp.maximum(jnp.dot(mx, w1t, preferred_element_type=jnp.float32), 0.0)
             + jnp.maximum(jnp.dot(avg, w1t, preferred_element_type=jnp.float32), 0.0))   # (Bb, hidden)
        y = jax.nn.sigmoid(jnp.dot(h, w2t, preferred_element_type=jnp.float32))           # (Bb, C)

        # out = x * y, broadcasting the per-channel scale over the HW lane dim.
        out_ref[...] = (xf * y[:, :, None]).astype(out_dtype)

    return kernel


def _pick_batch_block(B, max_bb):
    """Largest divisor of B that fits the VMEM budget; prefer >= 2 grid steps when B > 1."""
    bb = 1
    for d in range(1, min(B, max(1, max_bb)) + 1):
        if B % d == 0:
            bb = d
    if B > 1 and B // bb < 2:
        for d in range(bb - 1, 0, -1):
            if B % d == 0 and B // d >= 2:
                return d
    return bb


def channel_attention_forward(x, w1, w2):
    """x: (B, C, H, W).  w1: (C//ratio, C), w2: (C, C//ratio).  Returns (B, C, H, W) in x.dtype."""
    B, C, H, W = x.shape
    HW = H * W
    hidden = w1.shape[0]
    dtype = x.dtype
    itemsize = jnp.dtype(dtype).itemsize

    # Lane-dense last dim: pad HW up to a multiple of 128 (zero pad; max is masked in-kernel).
    HW_pad = ((HW + 127) // 128) * 128
    x2 = x.reshape(B, C, HW)                         # free reshape, stays NCHW
    if HW_pad != HW:
        x2 = jnp.pad(x2, ((0, 0), (0, 0), (0, HW_pad - HW)))

    # Batch block sized against a v7x-safe VMEM budget (2-deep in + 2-deep out buffers).
    block_bytes = C * HW_pad * itemsize
    budget = 48 * 1024 * 1024
    max_bb = max(1, budget // (4 * block_bytes))
    Bb = _pick_batch_block(B, max_bb)
    grid_len = B // Bb

    w_bytes = (w1.size + w2.size) * jnp.dtype(w1.dtype).itemsize
    vmem_need = 4 * Bb * block_bytes + 4 * w_bytes + (2 << 20)
    vmem_limit = int(min(max(vmem_need, 32 << 20), 64 << 20))   # cap at v7x physical VMEM

    kernel = _make_channel_attention_kernel(C, HW, HW_pad, hidden, Bb, dtype)

    cost = pl.CostEstimate(
        flops=int(B * (3 * C * HW + 8 * C * hidden)),
        transcendentals=int(B * C),
        bytes_accessed=int(2 * B * C * HW_pad * itemsize + 2 * w_bytes),
    )

    out = pl.pallas_call(
        kernel,
        out_shape=jax.ShapeDtypeStruct((B, C, HW_pad), dtype),
        grid_spec=pltpu.PrefetchScalarGridSpec(
            num_scalar_prefetch=0,
            grid=(grid_len,),
            in_specs=[
                pl.BlockSpec((Bb, C, HW_pad), lambda b: (b, 0, 0)),
                pl.BlockSpec((C, hidden), lambda b: (0, 0)),
                pl.BlockSpec((hidden, C), lambda b: (0, 0)),
            ],
            out_specs=pl.BlockSpec((Bb, C, HW_pad), lambda b: (b, 0, 0)),
        ),
        compiler_params=pltpu.CompilerParams(
            dimension_semantics=("parallel",),
            vmem_limit_bytes=vmem_limit,
        ),
        cost_estimate=cost,
    )(x2, jnp.transpose(w1), jnp.transpose(w2))

    if HW_pad != HW:
        out = out[..., :HW]
    return out.reshape(B, C, H, W)


def channel_attention_reference(x, w1, w2):
    """Pure-JAX mirror of the PyTorch forward (f32 math), for correctness checking."""
    xf = x.astype(jnp.float32)
    w1f = w1.astype(jnp.float32)
    w2f = w2.astype(jnp.float32)
    mx = jnp.max(xf, axis=(2, 3))                 # (B, C)  AdaptiveMaxPool2d(1)
    avg = jnp.mean(xf, axis=(2, 3))               # (B, C)  AdaptiveAvgPool2d(1)

    def fc(v):                                    # 1x1 convs on (B, C, 1, 1) == dense on (B, C)
        h = jnp.maximum(v @ w1f.T, 0.0)           # (B, hidden), ReLU
        return h @ w2f.T                          # (B, C)

    y = jax.nn.sigmoid(fc(mx) + fc(avg))          # (B, C)
    return xf * y[:, :, None, None]


if __name__ == "__main__":
    # Shapes consistent with the module: in_channel=128, ratio=16 -> hidden=8.
    B, C, H, W = 2, 128, 16, 16
    ratio = 16
    hidden = C // ratio

    key = jax.random.PRNGKey(0)
    k1, k2, k3 = jax.random.split(key, 3)
    x = jax.random.normal(k1, (B, C, H, W), jnp.float32)

    # Conv2d(C, C//r, 1, bias=False) weight (hid, C, 1, 1) -> (hid, C);
    # Conv2d(C//r, C, 1, bias=False) weight (C, hid, 1, 1) -> (C, hid).
    w1 = 0.1 * jax.random.normal(k2, (hidden, C), jnp.float32)
    w2 = 0.1 * jax.random.normal(k3, (C, hidden), jnp.float32)

    # --- float32 path (exact check) ---
    out = jax.block_until_ready(channel_attention_forward(x, w1, w2))
    ref = jax.block_until_ready(channel_attention_reference(x, w1, w2))
    assert out.shape == (B, C, H, W), out.shape
    assert out.dtype == x.dtype, out.dtype
    err = float(jnp.max(jnp.abs(out - ref)))
    if not (err == err) or err > 1e-4:
        raise AssertionError(f"f32 Pallas kernel mismatch vs reference, max abs err={err}")

    # --- native bf16 I/O path (kernel accumulates in f32, writes bf16 back) ---
    xb = x.astype(jnp.bfloat16)
    w1b = w1.astype(jnp.bfloat16)
    w2b = w2.astype(jnp.bfloat16)
    outb = jax.block_until_ready(channel_attention_forward(xb, w1b, w2b))
    refb = channel_attention_reference(xb, w1b, w2b)
    assert outb.dtype == jnp.bfloat16, outb.dtype
    errb = float(jnp.max(jnp.abs(outb.astype(jnp.float32) - refb)))
    if not (errb == errb) or errb > 5e-2:
        raise AssertionError(f"bf16 Pallas kernel mismatch vs reference, max abs err={errb}")

    # --- HW not a multiple of 128 (14x14 -> padded to 256 lanes, masked max) ---
    Hs = Ws = 14
    xs = jax.random.normal(k1, (B, C, Hs, Ws), jnp.float32)
    outs = jax.block_until_ready(channel_attention_forward(xs, w1, w2))
    refs = channel_attention_reference(xs, w1, w2)
    errs = float(jnp.max(jnp.abs(outs - refs)))
    if not (errs == errs) or errs > 1e-4:
        raise AssertionError(f"padded-HW Pallas kernel mismatch vs reference, max abs err={errs}")

    print("KERNEL_OK")
</pallas_src>

<mosaic_0001>
module attributes {stable_mosaic.version = 11 : i64} {
  func.func @kernel(%arg0: i32, %arg1: memref<1x128x256xf32, #tpu.memory_space<vmem>>, %arg2: memref<128x8xf32, #tpu.memory_space<vmem>>, %arg3: memref<8x128xf32, #tpu.memory_space<vmem>>, %arg4: memref<1x128x256xf32, #tpu.memory_space<vmem>>) attributes {dimension_semantics = [#tpu.dimension_semantics<parallel>], iteration_bounds = array<i64: 2>, scalar_prefetch = 0 : i64, scratch_operands = 0 : i64, tpu.core_type = #tpu.core_type<tc>, window_params = [{transform_indices = @transform_0, window_bounds = array<i64: 1, 128, 256>}, {pipeline_mode = #tpu.pipeline_mode<synchronous>, transform_indices = @transform_1, window_bounds = array<i64: 128, 8>}, {pipeline_mode = #tpu.pipeline_mode<synchronous>, transform_indices = @transform_2, window_bounds = array<i64: 8, 128>}, {transform_indices = @transform_3, window_bounds = array<i64: 1, 128, 256>}]} {
    %c0 = arith.constant 0 : index
    %c0_0 = arith.constant 0 : index
    %c0_1 = arith.constant 0 : index
    %0 = vector.load %arg1[%c0, %c0_0, %c0_1] : memref<1x128x256xf32, #tpu.memory_space<vmem>>, vector<1x128x256xf32>
    %cst = arith.constant dense<0xFF800000> : vector<1x128xf32>
    %1 = vector.multi_reduction <maximumf>, %0, %cst [2] : vector<1x128x256xf32> to vector<1x128xf32>
    %cst_2 = arith.constant dense<0.000000e+00> : vector<1x128xf32>
    %2 = vector.multi_reduction <add>, %0, %cst_2 [2] : vector<1x128x256xf32> to vector<1x128xf32>
    %cst_3 = arith.constant 3.906250e-03 : f32
    %3 = vector.broadcast %cst_3 : f32 to vector<1x128xf32>
    %4 = arith.mulf %2, %3 : vector<1x128xf32>
    %c0_4 = arith.constant 0 : index
    %c0_5 = arith.constant 0 : index
    %5 = vector.load %arg2[%c0_4, %c0_5] : memref<128x8xf32, #tpu.memory_space<vmem>>, vector<128x8xf32>
    %c0_6 = arith.constant 0 : index
    %c0_7 = arith.constant 0 : index
    %6 = vector.load %arg3[%c0_6, %c0_7] : memref<8x128xf32, #tpu.memory_space<vmem>>, vector<8x128xf32>
    %cst_8 = arith.constant dense<0.000000e+00> : vector<1x8xf32>
    %7 = tpu.matmul %1, %5, %cst_8 {dimension_numbers = #tpu.dot_dimension_numbers<[1], [0], [0], [1], [0, 0, 1, 1], [], []>} : vector<1x128xf32>, vector<128x8xf32>, vector<1x8xf32> -> vector<1x8xf32>
    %cst_9 = arith.constant 0.000000e+00 : f32
    %8 = vector.broadcast %cst_9 : f32 to vector<1x8xf32>
    %9 = arith.maximumf %7, %8 : vector<1x8xf32>
    %cst_10 = arith.constant dense<0.000000e+00> : vector<1x8xf32>
    %10 = tpu.matmul %4, %5, %cst_10 {dimension_numbers = #tpu.dot_dimension_numbers<[1], [0], [0], [1], [0, 0, 1, 1], [], []>} : vector<1x128xf32>, vector<128x8xf32>, vector<1x8xf32> -> vector<1x8xf32>
    %cst_11 = arith.constant 0.000000e+00 : f32
    %11 = vector.broadcast %cst_11 : f32 to vector<1x8xf32>
    %12 = arith.maximumf %10, %11 : vector<1x8xf32>
    %13 = arith.addf %9, %12 : vector<1x8xf32>
    %cst_12 = arith.constant dense<0.000000e+00> : vector<1x128xf32>
    %14 = tpu.matmul %13, %6, %cst_12 {dimension_numbers = #tpu.dot_dimension_numbers<[1], [0], [0], [1], [0, 0, 1, 1], [], []>} : vector<1x8xf32>, vector<8x128xf32>, vector<1x128xf32> -> vector<1x128xf32>
    %15 = arith.negf %14 : vector<1x128xf32>
    %16 = math.exp %15 : vector<1x128xf32>
    %cst_13 = arith.constant 1.000000e+00 : f32
    %17 = vector.broadcast %cst_13 : f32 to vector<1x128xf32>
    %18 = arith.addf %17, %16 : vector<1x128xf32>
    %19 = arith.divf %17, %18 : vector<1x128xf32>
    %20 = vector.shape_cast %19 : vector<1x128xf32> to vector<1x128x1xf32>
    %21 = vector.broadcast %20 : vector<1x128x1xf32> to vector<1x128x256xf32>
    %22 = arith.mulf %0, %21 : vector<1x128x256xf32>
    %c0_14 = arith.constant 0 : index
    %c0_15 = arith.constant 0 : index
    %c0_16 = arith.constant 0 : index
    %23 = vector.load %arg4[%c0_14, %c0_15, %c0_16] : memref<1x128x256xf32, #tpu.memory_space<vmem>>, vector<1x128x256xf32>
    tpu.vector_store %arg4[%c0_14, %c0_15, %c0_16], %22 {strides = array<i32>} : memref<1x128x256xf32, #tpu.memory_space<vmem>>, vector<1x128x256xf32>,
    return
  }
  func.func @transform_0(%arg0: i32) -> (i32, i32, i32) {
    %c0_i32 = arith.constant 0 : i32
    %c0_i32_0 = arith.constant 0 : i32
    %c0_i32_1 = arith.constant 0 : i32
    return %arg0, %c0_i32, %c0_i32_0 : i32, i32, i32
  }
  func.func @transform_1(%arg0: i32) -> (i32, i32) {
    %c0_i32 = arith.constant 0 : i32
    %c0_i32_0 = arith.constant 0 : i32
    %c0_i32_1 = arith.constant 0 : i32
    return %c0_i32, %c0_i32_0 : i32, i32
  }
  func.func @transform_2(%arg0: i32) -> (i32, i32) {
    %c0_i32 = arith.constant 0 : i32
    %c0_i32_0 = arith.constant 0 : i32
    %c0_i32_1 = arith.constant 0 : i32
    return %c0_i32, %c0_i32_0 : i32, i32
  }
  func.func @transform_3(%arg0: i32) -> (i32, i32, i32) {
    %c0_i32 = arith.constant 0 : i32
    %c0_i32_0 = arith.constant 0 : i32
    %c0_i32_1 = arith.constant 0 : i32
    return %arg0, %c0_i32, %c0_i32_0 : i32, i32, i32
  }
}

</mosaic_0001>

<bundles_post_ra>
// kernel: tpu_custom_call.1
= control target key start
LH: loop header
LB: loop body
LE: loop exit
PB: predicated region body
PF: predicated region fallthrough
CT: control target
= control target key end

     0   :  { %8 = vsyncpa [#allocation3], 0  ;;  %s1561_s0 = inlined_call_operand.hbm [shape: f32[2,128,256], index: 0, kind: input, shape index: {}]   ;;  %s1562_s1 = inlined_call_operand.vmem [shape: f32[128,8], index: 1, kind: input, shape index: {}]   ;;  %s1563_s2 = inlined_call_operand.vmem [shape: f32[8,128], index: 2, kind: input, shape index: {}]   ;;  %s1564_s3 = inlined_call_operand.hbm [shape: f32[2,128,256], index: 3, kind: output, shape index: {}]  }
   0x1   :  { %10 = vsyncpa [#allocation3 + $0x1], 0 }
   0x2   :  { %11 = vsyncpa [#allocation4], 0 }
   0x3   :  { %13 = vsyncpa [#allocation4 + $0x1], 0  ;;  %s1027_s12 = smov 0   ;;  %s1029_s13 = smov 0  }
   0x4   :  { %s1031_s14 = smov 0   ;;  %s1033_s15 = smov 0  }
   0x5 LB: > { %s1048_s16 = sadd.s32 4294967295, %s1001_s15   ;;  %s816_s17 = sadd.s32 4294967294, %s1001_s15   ;;  %s1001_s15 = sphi %s1033_s15, %s1600_s15   ;;  %s997_s14 = sphi %s1031_s14, %s1599_s14   ;;  %s993_s13 = sphi %s1029_s13, %s1598_s13   ;;  %s989_s12 = sphi %s1027_s12, %s1597_s12  }
   0x6   : > { %s1052_s18 = sadd.s32 1, %s1001_s15   ;;  %s26_s19 = sadd.s32 1, %s997_s14 }
   0x7   : > { %s23_s20 = ssub.s32 %s1001_s15, %s1052_s18  ;;  %p33_p0 = scmp.ne.s32.totalorder %s997_s14, %s993_s13 }
   0x8   : > { %p24_p1 = scmp.eq.s32.totalorder %s23_s20, 0  ;;  %p34_p2 = scmp.eq.s32.totalorder %s1001_s15, 0 }
   0x9   : > { %p39_p3 = scmp.ne.s32.totalorder %s993_s13, %s989_s12  ;;  %p40_p4 = scmp.eq.s32.totalorder %s1048_s16, 0 }
   0xa   : > { %s1064_s21 = scalar_select %p24_p1, %s997_s14, %s26_s19  }
   0xb   : > { %p1066_p5 = por %p34_p2, %p33_p0  ;;  %p1070_p6 = por %p40_p4, %p39_p3 }
   0xc   : > { %p105_p7 = scmp.eq.s32.totalorder %s1048_s16, 1  ;;  %p111_p8 = scmp.eq.s32.totalorder %s816_s17, 1 }
   0xd   : > { %p846_p10 = scmp.lt.s32.totalorder %s1001_s15, 2  ;;  %s137_s26 = sand.u32 1, %s997_s14  }
   0xe   : > { %p1077_p11 = por %p105_p7, %p33_p0  ;;  %p1081_p12 = por %p111_p8, %p39_p3 }
   0xf   : > { %s832_s27 = sshll.u32 %s1001_s15, 8  ;;  %s819_s28 = sshll.u32 %s137_s26, 8 }
  0x10   : > { %s146_s4 = scalar_lea.hbm %s1561_s0, %s832_s27  ;;  %s141_s6 = scalar_lea.vmem [#allocation2], %s819_s28 }
  0x11   : > { %s147_s5 = sshll.u32 %s146_s4, 4  ;;  %s149_s7 = sshll.u32 %s141_s6, 4  ;;  %s148_s5 = int_to_ptr.hbm [resolvable:$true] %s147_s5  ;;  %s150_s7 = int_to_ptr.vmem [resolvable:$true] %s149_s7 }
  0x12   : > { %p1092_p13 = pnand %p846_p10, %p1066_p5  ;;  %p822_p0 = scmp.ge.s32.totalorder %s1001_s15, 1 }
  0x13   : > { %p157_p1 = scmp.lt.s32.totalorder %s1001_s15, 3  ;;  %s138_s9 = scalar_lea.sflag [#allocation3], %s137_s26 }
  0x14   : > { %s905_s10 = sshra.s32 %s148_s5, 4  ;;  %p909_p3 = pneg %p1092_p13  ;;  %s906_s10 = int_to_ptr.hbm [resolvable:$true] %s905_s10 }
  0x15   : > { %s907_s11 = scalar_lea.hbm %s906_s10, 256  ;;  %s912_s20 = scalar_lea.hbm %s1561_s0, 512 }
  0x16   : > { %p908_p2 = scmp.ne.s32.totalorder %s906_s10, %s907_s11  ;;  %p913_p5 = scmp.lt.s32.totalorder %s906_s10, %s1561_s0 }
  0x17   : > { %p914_p8 = scmp.lt.s32.totalorder %s912_s20, %s907_s11 }
  0x18   : > { %p910_p4 = pnand %p909_p3, %p908_p2 }
  0x19   : > { %p915_p10 = por %p914_p8, %p913_p5 }
  0x1a   : > { %p911_p7 = pneg %p910_p4 }
  0x1c   : > { %p916_p9 = pnand %p915_p10, %p911_p7 }
  0x1e   : > { %919 = shalt.err (!%p916_p9)
}
  0x1f   : > { %s1003_s26 = smov 256   ;;  %s1004_s28 = smov 16  }
  0x20   : > { %841 = dma.hbm_to_vmem [thread:$0]  (!%p1092_p13), %s148_s5, 4096, %s150_s7, %s138_s9, %s1003_s26, %s1003_s26, %s1004_s28  }
  0x21   : > { %p158_p2 = pnand %p822_p0, %p157_p1 }
  0x23   : > { %161 = sbr.rel (%p158_p2) target bundleno = 742 (0x2e6), region = 32 }
  0x28   : > { %s1113_s29 = sand.u32 1, %s993_s13  }
  0x29   : > { %s823_s30 = sshll.u32 %s1113_s29, 8  ;;  %s164_s4 = scalar_lea.sflag [#allocation3], %s1113_s29 }
  0x2a   : > { %s1119_s6 = scalar_lea.vmem [#allocation2], %s823_s30 }
  0x2b   : > { %980 = dma.done.wait (%p1070_p6), %s164_s4, 4096  }
  0x2c   : > { %982 = vsyncadd (%p1070_p6), %s164_s4, 4294963200  ;;  %v1126_v0 = vld [vmem:[%s1119_s6 + $0x20] sm:$0xff]  ;;  %v1129_v1 = vld [vmem:[%s1119_s6 + $0x28] sm:$0xff]  ;;  %vm373_vm0 = vcmask 130112   ;;  %vm377_vm1 = vcmask 195712   ;;  %vm381_vm2 = vcmask 261312  }
  0x2d   : > { %v1132_v2 = vld [vmem:[%s1119_s6] sm:$0xff]  ;;  %v277_v3 = vadd.f32 %v1129_v1, %v1126_v0  ;;  %v1137_v4 = vld [vmem:[%s1119_s6 + $0x8] sm:$0xff]  ;;  %v1140_v5 = vld [vmem:[%s1119_s6 + $0x10] sm:$0xff]  ;;  %v229_v17 = vmax.f32 %v1126_v0, %v1129_v1  ;;  %vm385_vm3 = vcmask 326912   ;;  %vm389_vm4 = vcmask 392512   ;;  %s1463_s7 = scalar_lea.vmem [#allocation5], %s823_s30 }
  0x2e   : > { %v1143_v6 = vld [vmem:[%s1119_s6 + $0x18] sm:$0xff]  ;;  %v271_v7 = vadd.f32 %v1137_v4, %v1132_v2  ;;  %v1150_v9 = vld [vmem:[%s1119_s6 + $0x30] sm:$0xff]  ;;  %v223_v11 = vmax.f32 %v1132_v2, %v1137_v4  ;;  %v1162_v14 = vld [vmem:[%s1119_s6 + $0x40] sm:$0xff]  ;;  %vm393_vm5 = vcmask 458112   ;;  %vm397_vm6 = vcmask 523712   ;;  %s833_s30 = sshll.u32 %s1048_s16, 8 }
  0x2f   : > { %v226_v8 = vmax.f32 %v1140_v5, %v1143_v6  ;;  %278 = vadd.xlane.f32.xlu1 %v277_v3  ;;  %v1153_v10 = vld [vmem:[%s1119_s6 + $0x38] sm:$0xff]  ;;  %v274_v12 = vadd.f32 %v1143_v6, %v1140_v5  ;;  %v1165_v15 = vld [vmem:[%s1119_s6 + $0x48] sm:$0xff]  ;;  %v1174_v19 = vld [vmem:[%s1119_s6 + $0x50] sm:$0xff]  ;;  %vm401_vm7 = vcmask 589312   ;;  %vm405_vm8 = vcmask 654912   ;;  %s739_s10 = scalar_lea.hbm %s1564_s3, %s833_s30  ;;  %s740_s11 = sshll.u32 %s1463_s7, 4  ;;  %s741_s11 = int_to_ptr.vmem [resolvable:$true] %s740_s11 }
  0x30   : > { %272 = vadd.xlane.f32.xlu0 %v271_v7  ;;  %v280_v13 = vadd.f32 %v1153_v10, %v1150_v9  ;;  %v283_v16 = vadd.f32 %v1165_v15, %v1162_v14  ;;  %v232_v18 = vmax.f32 %v1150_v9, %v1153_v10  ;;  %v1177_v20 = vld [vmem:[%s1119_s6 + $0x58] sm:$0xff]  ;;  %v1180_v21 = vld [vmem:[%s1119_s6 + $0x60] sm:$0xff]  ;;  %v1183_v22 = vld [vmem:[%s1119_s6 + $0x68] sm:$0xff]  ;;  %v235_v23 = vmax.f32 %v1162_v14, %v1165_v15  ;;  %s742_s17 = sshll.u32 %s739_s10, 4  ;;  %s728_s16 = scalar_lea.sflag [#allocation4], %s1113_s29  ;;  %s743_s17 = int_to_ptr.hbm [resolvable:$true] %s742_s17 }
  0x31   : > { %227 = vmax.xlane.f32.xlu2 %v226_v8  ;;  %v286_v24 = vadd.f32 %v1177_v20, %v1174_v19  ;;  %v289_v25 = vadd.f32 %v1183_v22, %v1180_v21  ;;  %v1192_v26 = vld [vmem:[%s1119_s6 + $0x70] sm:$0xff]  ;;  %v1195_v27 = vld [vmem:[%s1119_s6 + $0x78] sm:$0xff]  ;;  %v238_v29 = vmax.f32 %v1174_v19, %v1177_v20  ;;  %v241_v30 = vmax.f32 %v1180_v21, %v1183_v22  ;;  %v1204_v31 = vld [vmem:[%s1119_s6 + $0x80] sm:$0xff]  ;;  %s949_s19 = sshra.s32 %s743_s17, 4  ;;  %s955_s26 = scalar_lea.hbm %s1564_s3, 512  ;;  %s950_s19 = int_to_ptr.hbm [resolvable:$true] %s949_s19 }
  0x32   : > { %v292_v28 = vadd.f32 %v1195_v27, %v1192_v26  ;;  %v1207_v32 = vld [vmem:[%s1119_s6 + $0x88] sm:$0xff]  ;;  %v1210_v33 = vld [vmem:[%s1119_s6 + $0x90] sm:$0xff]  ;;  %v1213_v34 = vld [vmem:[%s1119_s6 + $0x98] sm:$0xff]  ;;  %v244_v35 = vmax.f32 %v1192_v26, %v1195_v27  ;;  %vm409_vm9 = vcmask 720512   ;;  %vm413_vm10 = vcmask 786112   ;;  %s951_s20 = scalar_lea.hbm %s950_s19, 256  ;;  %p956_p0 = scmp.lt.s32.totalorder %s950_s19, %s1564_s3 }
  0x33   : > { %v295_v36 = vadd.f32 %v1207_v32, %v1204_v31  ;;  %v298_v37 = vadd.f32 %v1213_v34, %v1210_v33  ;;  %v1222_v38 = vld [vmem:[%s1119_s6 + $0xa0] sm:$0xff]  ;;  %v1225_v39 = vld [vmem:[%s1119_s6 + $0xa8] sm:$0xff]  ;;  %v247_v41 = vmax.f32 %v1204_v31, %v1207_v32  ;;  %v250_v42 = vmax.f32 %v1210_v33, %v1213_v34  ;;  %v1234_v43 = vld [vmem:[%s1119_s6 + $0xb0] sm:$0xff]  ;;  %p952_p6 = scmp.ne.s32.totalorder %s950_s19, %s951_s20  ;;  %p957_p1 = scmp.lt.s32.totalorder %s955_s26, %s951_s20 }
  0x34   : > { %v301_v40 = vadd.f32 %v1225_v39, %v1222_v38  ;;  %1579 = vst [vmem:[#allocation8_spill] sm:$0xff] %v1234_v43  ;;  %v1237_v44 = vld [vmem:[%s1119_s6 + $0xb8] sm:$0xff]  ;;  %v1240_v45 = vld [vmem:[%s1119_s6 + $0xc0] sm:$0xff]  ;;  %v1243_v46 = vld [vmem:[%s1119_s6 + $0xc8] sm:$0xff]  ;;  %v253_v47 = vmax.f32 %v1222_v38, %v1225_v39  ;;  %vm417_vm11 = vcmask 851712   ;;  %vm421_vm12 = vcmask 917312  }
  0x35   : > { %1580 = vst [vmem:[#allocation9_spill] sm:$0xff] %v1237_v44  ;;  %v304_v48 = vadd.f32 %v1237_v44, %v1234_v43  ;;  %v307_v49 = vadd.f32 %v1243_v46, %v1240_v45  ;;  %v1252_v50 = vld [vmem:[%s1119_s6 + $0xd0] sm:$0xff]  ;;  %v1255_v51 = vld [vmem:[%s1119_s6 + $0xd8] sm:$0xff]  ;;  %v256_v53 = vmax.f32 %v1234_v43, %v1237_v44  ;;  %v259_v54 = vmax.f32 %v1240_v45, %v1243_v46  ;;  %v1264_v55 = vld [vmem:[%s1119_s6 + $0xe0] sm:$0xff]  ;;  %p953_p9 = pnand %p952_p6, %p1077_p11  ;;  %p958_p3 = por %p957_p1, %p956_p0 }
  0x36   : > { %1581 = vst [vmem:[#allocation10_spill] sm:$0xff] %v1240_v45  ;;  %v310_v52 = vadd.f32 %v1255_v51, %v1252_v50  ;;  %v1267_v56 = vld [vmem:[%s1119_s6 + $0xe8] sm:$0xff]  ;;  %v1270_v57 = vld [vmem:[%s1119_s6 + $0xf0] sm:$0xff]  ;;  %v1273_v58 = vld [vmem:[%s1119_s6 + $0xf8] sm:$0xff]  ;;  %v262_v59 = vmax.f32 %v1252_v50, %v1255_v51  ;;  %vm425_vm13 = vcmask 982912   ;;  %vm429_vm14 = vcmask 1048512  }
  0x37   : > { %224 = vmax.xlane.f32.xlu1 %v223_v11  ;;  %1582 = vst [vmem:[#allocation11_spill] sm:$0xff] %v1243_v46  ;;  %v313_v60 = vadd.f32 %v1267_v56, %v1264_v55  ;;  %v316_v61 = vadd.f32 %v1273_v58, %v1270_v57  ;;  %v268_v62 = vmax.f32 %v1270_v57, %v1273_v58  ;;  %vm523_vm15 = vcmask 64512   ;;  %p954_p13 = pneg %p953_p9 }
  0x38   : > { %275 = vadd.xlane.f32.xlu0 %v274_v12  ;;  %1583 = vst [vmem:[#allocation12_spill] sm:$0xff] %v1264_v55  ;;  %v265_v63 = vmax.f32 %v1264_v55, %v1267_v56 }
  0x39   : > { %281 = vadd.xlane.f32.xlu2 %v280_v13  ;;  %1584 = vst [vmem:[#allocation13_spill] sm:$0xff] %v1267_v56  ;;  %p959_p4 = pnand %p958_p3, %p954_p13 }
  0x3a   : > { %1585 = vst [vmem:[#allocation14_spill] sm:$0xff] %v1270_v57 }
  0x3b   : > { %1586 = vst [vmem:[#allocation15_spill] sm:$0xff] %v1273_v58 }
  0x3f   : > { %284 = vadd.xlane.f32.xlu1 %v283_v16  ;;  %v350_v16 = vld [vmem:[%s1562_s1 + $0x78] sm:$0xff] }
  0x40   : > { %230 = vmax.xlane.f32.xlu0 %v229_v17  ;;  %501 = vmatpush.msra.mxu1 %v350_v16 }
  0x41   : > { %233 = vmax.xlane.f32.xlu2 %v232_v18  ;;  %432 = vmatpush.msra.mxu0 %v350_v16  ;;  %v1565_v16 = vlaneseq }
  0x47   : > { %236 = vmax.xlane.f32.xlu1 %v235_v23 }
  0x48   : > { %287 = vadd.xlane.f32.xlu0 %v286_v24  ;;  %v349_v24 = vld [vmem:[%s1562_s1 + $0x70] sm:$0xff] }
  0x49   : > { %290 = vadd.xlane.f32.xlu2 %v289_v25  ;;  %502 = vmatpush.msra.mxu1 %v349_v24  ;;  %v348_v25 = vld [vmem:[%s1562_s1 + $0x68] sm:$0xff] }
  0x4a   : > { %433 = vmatpush.msra.mxu0 %v349_v24  ;;  %v336_v24 = vld [vmem:[%s1562_s1 + $0x8] sm:$0xff] }
  0x4b   : > { %503 = vmatpush.msra.mxu1 %v348_v25 }
  0x4c   : > { %434 = vmatpush.msra.mxu0 %v348_v25  ;;  %v335_v25 = vld [vmem:[%s1562_s1] sm:$0xff] }
  0x4f   : > { %293 = vadd.xlane.f32.xlu1 %v292_v28  ;;  %v347_v28 = vld [vmem:[%s1562_s1 + $0x60] sm:$0xff] }
  0x50   : > { %239 = vmax.xlane.f32.xlu0 %v238_v29  ;;  %v346_v29 = vld [vmem:[%s1562_s1 + $0x58] sm:$0xff]  ;;  %504 = vmatpush.msra.mxu1 %v347_v28 }
  0x51   : > { %242 = vmax.xlane.f32.xlu2 %v241_v30  ;;  %435 = vmatpush.msra.mxu0 %v347_v28  ;;  %v1364_v28 = vand.u32 127, %v1565_v16 }
  0x52   : > { %505 = vmatpush.msra.mxu1 %v346_v29 }
  0x53   : > { %436 = vmatpush.msra.mxu0 %v346_v29  ;;  %v391_v55 = vadd.s32 4294967248, %v1364_v28  ;;  %v395_v44 = vadd.s32 4294967240, %v1364_v28  ;;  %v403_v43 = vadd.s32 4294967224, %v1364_v28 }
  0x57   : > { %245 = vmax.xlane.f32.xlu1 %v244_v35 }
  0x58   : > { %296 = vadd.xlane.f32.xlu0 %v295_v36 }
  0x59   : > { %299 = vadd.xlane.f32.xlu2 %v298_v37  ;;  %v345_v37 = vld [vmem:[%s1562_s1 + $0x50] sm:$0xff] }
  0x5a   : > { %506 = vmatpush.msra.mxu1 %v345_v37  ;;  %437 = vmatpush.msra.mxu0 %v345_v37 }
  0x5f   : > { %302 = vadd.xlane.f32.xlu1 %v301_v40  ;;  %v344_v40 = vld [vmem:[%s1562_s1 + $0x48] sm:$0xff] }
  0x60   : > { %248 = vmax.xlane.f32.xlu0 %v247_v41  ;;  %507 = vmatpush.msra.mxu1 %v344_v40  ;;  %v343_v41 = vld [vmem:[%s1562_s1 + $0x40] sm:$0xff] }
  0x61   : > { %251 = vmax.xlane.f32.xlu2 %v250_v42  ;;  %438 = vmatpush.msra.mxu0 %v344_v40  ;;  %v342_v42 = vld [vmem:[%s1562_s1 + $0x38] sm:$0xff] }
  0x62   : > { %508 = vmatpush.msra.mxu1 %v343_v41 }
  0x63   : > { %439 = vmatpush.msra.mxu0 %v343_v41  ;;  %v371_v41 = vadd.s32 4294967288, %v1364_v28 }
  0x64   : > { %509 = vmatpush.msra.mxu1 %v342_v42 }
  0x65   : > { %440 = vmatpush.msra.mxu0 %v342_v42 }
  0x67   : > { %254 = vmax.xlane.f32.xlu1 %v253_v47 }
  0x68   : > { %305 = vadd.xlane.f32.xlu0 %v304_v48 }
  0x69   : > { %308 = vadd.xlane.f32.xlu2 %v307_v49 }
  0x6f   : > { %311 = vadd.xlane.f32.xlu1 %v310_v52  ;;  %v341_v52 = vld [vmem:[%s1562_s1 + $0x30] sm:$0xff] }
  0x70   : > { %257 = vmax.xlane.f32.xlu0 %v256_v53  ;;  %510 = vmatpush.msra.mxu1 %v341_v52  ;;  %v340_v53 = vld [vmem:[%s1562_s1 + $0x28] sm:$0xff] }
  0x71   : > { %260 = vmax.xlane.f32.xlu2 %v259_v54  ;;  %441 = vmatpush.msra.mxu0 %v341_v52  ;;  %v339_v54 = vld [vmem:[%s1562_s1 + $0x20] sm:$0xff] }
  0x72   : > { %511 = vmatpush.msra.mxu1 %v340_v53 }
  0x73   : > { %442 = vmatpush.msra.mxu0 %v340_v53 }
  0x74   : > { %512 = vmatpush.msra.mxu1 %v339_v54 }
  0x75   : > { %443 = vmatpush.msra.mxu0 %v339_v54  ;;  %v375_v54 = vadd.s32 4294967280, %v1364_v28 }
  0x77   : > { %263 = vmax.xlane.f32.xlu1 %v262_v59  ;;  %v338_v59 = vld [vmem:[%s1562_s1 + $0x18] sm:$0xff] }
  0x78   : > { %314 = vadd.xlane.f32.xlu0 %v313_v60  ;;  %513 = vmatpush.msra.mxu1 %v338_v59 }
  0x79   : > { %317 = vadd.xlane.f32.xlu2 %v316_v61  ;;  %444 = vmatpush.msra.mxu0 %v338_v59 }
  0x7f   : > { %269 = vmax.xlane.f32.xlu1 %v268_v62 }
  0x80   : > { %266 = vmax.xlane.f32.xlu0 %v265_v63  ;;  %v337_v63 = vld [vmem:[%s1562_s1 + $0x10] sm:$0xff] }
  0x81   : > { %514 = vmatpush.msra.mxu1 %v337_v63  ;;  %445 = vmatpush.msra.mxu0 %v337_v63 }
  0x83   : > { %515 = vmatpush.msra.mxu1 %v336_v24  ;;  %446 = vmatpush.msra.mxu0 %v336_v24 }
  0x85   : > { %516 = vmatpush.msra.mxu1 %v335_v25  ;;  %447 = vmatpush.msra.mxu0 %v335_v25 }
  0xa2   : > { %v1285_v3 = vpop.xlane.xlu1 %278 }
  0xa3   : > { %v1287_v7 = vpop.xlane.xlu0 %272  ;;  %v321_v59 = vmul.f32 0.00390625, %v1285_v3 }
  0xa4   : > { %v1289_v8 = vpop.xlane.xlu2 %227  ;;  %v319_v40 = vmul.f32 0.00390625, %v1287_v7  ;;  %v383_v7 = vadd.s32 4294967264, %v1364_v28 }
  0xa5   : > { %v472_v57 = vperm.slane %v321_v59, %v375_v54 }
  0xa6   : > { %v469_v63 = vperm.slane %v319_v40, %v1364_v28  ;;  %v372_v40 = vperm.slane %v1289_v8, %v371_v41 }
  0xaa   : > { %v1291_v11 = vpop.xlane.xlu1 %224 }
  0xab   : > { %v276_v12 = vpop.xlane.xlu0 %275 }
  0xac   : > { %v1293_v13 = vpop.xlane.xlu2 %281  ;;  %v320_v29 = vmul.f32 0.00390625, %v276_v12  ;;  %v379_v12 = vadd.s32 4294967272, %v1364_v28 }
  0xad   : > { %v322_v24 = vmul.f32 0.00390625, %v1293_v13  ;;  %v370_v13 = vperm.slane %v1291_v11, %v1364_v28  ;;  %v399_v11 = vadd.s32 4294967232, %v1364_v28 }
  0xae   : > { %v470_v53 = vperm.slane %v320_v29, %v371_v41  ;;  %v387_v29 = vadd.s32 4294967256, %v1364_v28 }
  0xaf   : > { %v474_v56 = vperm.slane %v322_v24, %v379_v12  ;;  %v374_v24 = vsel %vm373_vm0, %v372_v40, %v370_v13 }
  0xb0   : > { %v471_v16 = vsel %vm373_vm0, %v470_v53, %v469_v63 }
  0xb1   : > { %v473_v53 = vsel %vm377_vm1, %v472_v57, %v471_v16 }
  0xb2   : > { %v1298_v17 = vpop.xlane.xlu1 %284  ;;  %v475_v57 = vsel %vm381_vm2, %v474_v56, %v473_v53 }
  0xb3   : > { %v1300_v18 = vpop.xlane.xlu0 %230  ;;  %v323_v25 = vmul.f32 0.00390625, %v1298_v17 }
  0xb4   : > { %v1302_v23 = vpop.xlane.xlu2 %233  ;;  %v376_v63 = vperm.slane %v1300_v18, %v375_v54 }
  0xb5   : > { %v476_v45 = vperm.slane %v323_v25, %v383_v7  ;;  %v380_v18 = vperm.slane %v1302_v23, %v379_v12  ;;  %v407_v23 = vadd.s32 4294967216, %v1364_v28 }
  0xba   : > { %v1316_v30 = vpop.xlane.xlu1 %236 }
  0xbb   : > { %v288_v35 = vpop.xlane.xlu0 %287  ;;  %v384_v16 = vperm.slane %v1316_v30, %v383_v7 }
  0xbc   : > { %v1318_v36 = vpop.xlane.xlu2 %290  ;;  %v324_v58 = vmul.f32 0.00390625, %v288_v35 }
  0xbd   : > { %v325_v35 = vmul.f32 0.00390625, %v1318_v36  ;;  %v378_v36 = vsel %vm377_vm1, %v376_v63, %v374_v24 }
  0xbe   : > { %v478_v59 = vperm.slane %v324_v58, %v387_v29  ;;  %v477_v58 = vsel %vm385_vm3, %v476_v45, %v475_v57  ;;  %v382_v53 = vsel %vm381_vm2, %v380_v18, %v378_v36  ;;  %v411_v45 = vadd.s32 4294967208, %v1364_v28 }
  0xbf   : > { %v480_v54 = vperm.slane %v325_v35, %v391_v55  ;;  %v386_v35 = vsel %vm385_vm3, %v384_v16, %v382_v53  ;;  %v419_v36 = vadd.s32 4294967192, %v1364_v28 }
  0xc2   : > { %v1332_v47 = vpop.xlane.xlu1 %293 }
  0xc3   : > { %v1334_v48 = vpop.xlane.xlu0 %239  ;;  %v326_v8 = vmul.f32 0.00390625, %v1332_v47  ;;  %v479_v47 = vsel %vm389_vm4, %v478_v59, %v477_v58 }
  0xc4   : > { %v1336_v49 = vpop.xlane.xlu2 %242  ;;  %v388_v40 = vperm.slane %v1334_v48, %v387_v29  ;;  %v481_v59 = vsel %vm393_vm5, %v480_v54, %v479_v47  ;;  %v415_v29 = vadd.s32 4294967200, %v1364_v28  ;;  %v423_v54 = vadd.s32 4294967184, %v1364_v28 }
  0xc5   : > { %v482_v25 = vperm.slane %v326_v8, %v395_v44 }
  0xc6   : > { %v390_v8 = vsel %vm389_vm4, %v388_v40, %v386_v35 }
  0xc7   : > { %v483_v48 = vsel %vm397_vm6, %v482_v25, %v481_v59 }
  0xca   : > { %v1350_v60 = vpop.xlane.xlu1 %245 }
  0xcb   : > { %v297_v61 = vpop.xlane.xlu0 %296  ;;  %v396_v57 = vperm.slane %v1350_v60, %v395_v44  ;;  %v427_v44 = vadd.s32 4294967176, %v1364_v28 }
  0xcc   : > { %v1352_v62 = vpop.xlane.xlu2 %299  ;;  %v327_v41 = vmul.f32 0.00390625, %v297_v61 }
  0xcd   : > { %v328_v61 = vmul.f32 0.00390625, %v1352_v62  ;;  %v392_v62 = vperm.slane %v1336_v49, %v391_v55 }
  0xce   : > { %v484_v56 = vperm.slane %v327_v41, %v399_v11 }
  0xcf   : > { %v394_v55 = vsel %vm393_vm5, %v392_v62, %v390_v8 }
  0xd0   : > { %v485_v41 = vsel %vm401_vm7, %v484_v56, %v483_v48  ;;  %v398_v60 = vsel %vm397_vm6, %v396_v57, %v394_v55 }
  0xd2   : > { %v303_v37 = vpop.xlane.xlu1 %302 }
  0xd3   : > { %v1368_v42 = vpop.xlane.xlu0 %248  ;;  %v329_v12 = vmul.f32 0.00390625, %v303_v37  ;;  %v486_v37 = vperm.slane %v328_v61, %v403_v43 }
  0xd4   : > { %v1370_v52 = vpop.xlane.xlu2 %251  ;;  %v400_v16 = vperm.slane %v1368_v42, %v399_v11 }
  0xd5   : > { %v487_v49 = vsel %vm405_vm8, %v486_v37, %v485_v41  ;;  %v404_v61 = vperm.slane %v1370_v52, %v403_v43 }
  0xda   : > { %v1381_v3 = vpop.xlane.xlu1 %254 }
  0xdb   : > { %v306_v46 = vpop.xlane.xlu0 %305 }
  0xdc   : > { %v309_v17 = vpop.xlane.xlu2 %308  ;;  %v330_v30 = vmul.f32 0.00390625, %v306_v46  ;;  %v488_v46 = vperm.slane %v329_v12, %v407_v23  ;;  %v402_v12 = vsel %vm401_vm7, %v400_v16, %v398_v60 }
  0xdd   : > { %v331_v24 = vmul.f32 0.00390625, %v309_v17  ;;  %v406_v43 = vsel %vm405_vm8, %v404_v61, %v402_v12 }
  0xde   : > { %v490_v18 = vperm.slane %v330_v30, %v411_v45  ;;  %v489_v47 = vsel %vm409_vm9, %v488_v46, %v487_v49 }
  0xdf   : > { %v492_v25 = vperm.slane %v331_v24, %v415_v29 }
  0xe0   : > { %v491_v42 = vsel %vm413_vm10, %v490_v18, %v489_v47 }
  0xe1   : > { %v493_v28 = vsel %vm417_vm11, %v492_v25, %v491_v42 }
  0xe2   : > { %v312_v13 = vpop.xlane.xlu1 %311 }
  0xe3   : > { %v258_v7 = vpop.xlane.xlu0 %257  ;;  %v332_v58 = vmul.f32 0.00390625, %v312_v13  ;;  %v408_v13 = vperm.slane %v1381_v3, %v407_v23 }
  0xe4   : > { %v261_v63 = vpop.xlane.xlu2 %260  ;;  %v412_v35 = vperm.slane %v258_v7, %v411_v45 }
  0xe5   : > { %v494_v11 = vperm.slane %v332_v58, %v419_v36  ;;  %v410_v62 = vsel %vm409_vm9, %v408_v13, %v406_v43  ;;  %v416_v37 = vperm.slane %v261_v63, %v415_v29  ;;  %v351_v29 = vld [vmem:[%s1563_s2] sm:$0xff] }
  0xe6   : > { %v414_v3 = vsel %vm413_vm10, %v412_v35, %v410_v62  ;;  %542 = vmatpush.msra.mxu2 %v351_v29 }
  0xe7   : > { %v495_v52 = vsel %vm421_vm12, %v494_v11, %v493_v28  ;;  %v418_v24 = vsel %vm417_vm11, %v416_v37, %v414_v3 }
  0xea   : > { %v264_v17 = vpop.xlane.xlu1 %263 }
  0xeb   : > { %v315_v40 = vpop.xlane.xlu0 %314  ;;  %v420_v23 = vperm.slane %v264_v17, %v419_v36 }
  0xec   : > { %v318_v56 = vpop.xlane.xlu2 %317  ;;  %v333_v53 = vmul.f32 0.00390625, %v315_v40 }
  0xed   : > { %v334_v30 = vmul.f32 0.00390625, %v318_v56  ;;  %v422_v18 = vsel %vm421_vm12, %v420_v23, %v418_v24 }
  0xee   : > { %v496_v59 = vperm.slane %v333_v53, %v423_v54 }
  0xef   : > { %v498_v48 = vperm.slane %v334_v30, %v427_v44 }
  0xf0   : > { %v497_v8 = vsel %vm425_vm13, %v496_v59, %v495_v52 }
  0xf1   : > { %v499_v45 = vsel %vm429_vm14, %v498_v48, %v497_v8 }
  0xf2   : > { %517 = vmatmul.f32.vlgmr.msra.gmra.mxu1 %v499_v45  ;;  %v270_v7 = vpop.xlane.xlu1 %269 }
  0xf3   : > { %v267_v41 = vpop.xlane.xlu0 %266  ;;  %v428_v46 = vperm.slane %v270_v7, %v427_v44 }
  0xf4   : > { %v424_v57 = vperm.slane %v267_v41, %v423_v54  ;;  %v1587_v54 = vlaneseq }
  0xf6   : > { %v426_v58 = vsel %vm425_vm13, %v424_v57, %v422_v18  ;;  %v1441_v25 = vshrl.u32 %v1587_v54, 7 }
  0xf7   : > { %v430_v63 = vsel %vm429_vm14, %v428_v46, %v426_v58 }
  0xf8   : > { %448 = vmatmul.f32.vlgmr.msra.gmra.mxu0 %v430_v63  ;;  %884 = vset.pattern.permute.xlu2 %v1441_v25  ;;  %v581_v17 = vadd.s32 16, %v1441_v25  ;;  %v575_v44 = vadd.s32 8, %v1441_v25  ;;  %v599_v52 = vadd.s32 40, %v1441_v25  ;;  %v617_v62 = vadd.s32 64, %v1441_v25 }
  0xf9   : > { %v587_v37 = vadd.s32 24, %v1441_v25  ;;  %v611_v8 = vadd.s32 56, %v1441_v25  ;;  %v647_v3 = vadd.s32 104, %v1441_v25  ;;  %v593_v23 = vadd.s32 32, %v1441_v25 }
  0xfa   : > { %886 = vset.pattern.permute.xlu1 %v581_v17  ;;  %885 = vset.pattern.permute.xlu0 %v575_v44  ;;  %v629_v45 = vadd.s32 80, %v1441_v25  ;;  %v605_v7 = vadd.s32 48, %v1441_v25  ;;  %v659_v41 = vadd.s32 120, %v1441_v25  ;;  %v641_v46 = vadd.s32 96, %v1441_v25 }
  0xfb   : > { %v623_v24 = vadd.s32 72, %v1441_v25  ;;  %v635_v57 = vadd.s32 88, %v1441_v25  ;;  %v653_v18 = vadd.s32 112, %v1441_v25 }
 0x16f   : > { %v518_v36 = vpop.f32.mrf.mxu1 }
 0x170   : > { %v521_v55 = vmax.f32 %v518_v36, 0.0 }
 0x175   : > { %v449_v16 = vpop.f32.mrf.mxu0 }
 0x176   : > { %v452_v49 = vmax.f32 %v449_v16, 0.0 }
 0x178   : > { %v522_v47 = vadd.f32 %v521_v55, %v452_v49 }
 0x17a   : > { %825 = vmatmul.msk.f32.vlgmr.msra.gmra.mxu2 %vm523_vm15, %v522_v47 }
 0x1fd   : > { %v544_v60 = vpop.f32.mrf.mxu2 }
 0x1fe   : > { %v826_v61 = vmul.f32 -1.442695, %v544_v60 }
 0x200   : > { %901 = vpow2.f32 %v826_v61 }
 0x206   : > { %v902_v42 = vpop.eup %901 }
 0x207   : > { %v550_v11 = vadd.f32 1.0, %v902_v42 }
 0x209   : > { %903 = vrcp.f32 %v550_v11  ;;  %v562_v13 = vand.u32 2147483648, %v550_v11  ;;  %v560_v30 = vand.u32 2147483647, %v550_v11  ;;  %vm556_vm1 = vweird.f32 %v550_v11 }
 0x20b   : > { %v563_v28 = vor.u32 1.1754944e-38, %v562_v13  ;;  %vm561_vm3 = vcmp.eq.f32.partialorder %v560_v30, 8.507059e+37 }
 0x20f   : > { %v904_v40 = vpop.eup %903 }
 0x210   : > { %v552_v56 = vmul.f32 %v904_v40, %v550_v11  ;;  %vm557_vm0 = vweird.f32 %v904_v40 }
 0x211   : > { %vm558_vm2 = vmor %vm556_vm1, %vm557_vm0 }
 0x212   : > { %v553_v12 = vsub.f32 1.0, %v552_v56  ;;  %v1588_v56 = vld [vmem:[#allocation8_spill] sm:$0xff] }
 0x214   : > { %v554_v53 = vmul.f32 %v904_v40, %v553_v12 }
 0x216   : > { %v555_v35 = vadd.f32 %v904_v40, %v554_v53  ;;  %v1590_v53 = vld [vmem:[#allocation10_spill] sm:$0xff] }
 0x218   : > { %v559_v59 = vsel %vm558_vm2, %v904_v40, %v555_v35  ;;  %v1591_v35 = vld [vmem:[#allocation11_spill] sm:$0xff] }
 0x219   : > { %v564_v48 = vsel %vm561_vm3, %v563_v28, %v559_v59 }
 0x21a   : > { %v566_v43 = vperm.slane %v564_v48, 0  ;;  %v1593_v48 = vld [vmem:[#allocation13_spill] sm:$0xff] }
 0x21c   : > { %583 = vperm.xlu1 %886, %v566_v43   ;;  %577 = vperm.xlu0 %885, %v566_v43  }
 0x21d   : > { %571 = vperm.xlu2 %884, %v566_v43  }
 0x224   : > { %889 = vset.pattern.permute.xlu1 %v599_v52  ;;  %892 = vset.pattern.permute.xlu0 %v617_v62  ;;  %v1594_v62 = vld [vmem:[#allocation14_spill] sm:$0xff] }
 0x225   : > { %887 = vset.pattern.permute.xlu2 %v587_v37 }
 0x22c   : > { %601 = vperm.xlu1 %889, %v566_v43   ;;  %619 = vperm.xlu0 %892, %v566_v43  }
 0x22d   : > { %589 = vperm.xlu2 %887, %v566_v43  }
 0x234   : > { %891 = vset.pattern.permute.xlu1 %v611_v8  ;;  %897 = vset.pattern.permute.xlu0 %v647_v3  ;;  %v1595_v8 = vld [vmem:[#allocation15_spill] sm:$0xff] }
 0x235   : > { %888 = vset.pattern.permute.xlu2 %v593_v23 }
 0x23c   : > { %613 = vperm.xlu1 %891, %v566_v43   ;;  %649 = vperm.xlu0 %897, %v566_v43  }
 0x23d   : > { %595 = vperm.xlu2 %888, %v566_v43  }
 0x244   : > { %894 = vset.pattern.permute.xlu1 %v629_v45  ;;  %900 = vset.pattern.permute.xlu0 %v659_v41 }
 0x245   : > { %890 = vset.pattern.permute.xlu2 %v605_v7 }
 0x24c   : > { %631 = vperm.xlu1 %894, %v566_v43  }
 0x24d   : > { %607 = vperm.xlu2 %890, %v566_v43  }
 0x254   : > { %896 = vset.pattern.permute.xlu1 %v641_v46 }
 0x255   : > { %893 = vset.pattern.permute.xlu2 %v623_v24 }
 0x25c   : > { %643 = vperm.xlu1 %896, %v566_v43  }
 0x25d   : > { %625 = vperm.xlu2 %893, %v566_v43  }
 0x264   : > { %899 = vset.pattern.permute.xlu1 %v659_v41 }
 0x265   : > { %895 = vset.pattern.permute.xlu2 %v635_v57 }
 0x26c   : > { %661 = vperm.xlu1 %899, %v566_v43  }
 0x26d   : > { %637 = vperm.xlu2 %895, %v566_v43  }
 0x275   : > { %898 = vset.pattern.permute.xlu2 %v653_v18 }
 0x277   : > { %v572_v58 = vpop.permute.xlu2 %571 }
 0x278   : > { %v663_v63 = vmul.f32 %v572_v58, %v1132_v2  ;;  %v664_v29 = vmul.f32 %v572_v58, %v1137_v4 }
 0x27a   : > { %695 = vst [vmem:[%s1463_s7] sm:$0xff] %v663_v63 }
 0x27b   : > { %696 = vst [vmem:[%s1463_s7 + $0x8] sm:$0xff] %v664_v29 }
 0x27d   : > { %655 = vperm.xlu2 %898, %v566_v43  }
 0x287   : > { %v590_v36 = vpop.permute.xlu2 %589 }
 0x288   : > { %v669_v16 = vmul.f32 %v590_v36, %v1150_v9  ;;  %v670_v2 = vmul.f32 %v590_v36, %v1153_v10 }
 0x28a   : > { %701 = vst [vmem:[%s1463_s7 + $0x30] sm:$0xff] %v669_v16 }
 0x28b   : > { %702 = vst [vmem:[%s1463_s7 + $0x38] sm:$0xff] %v670_v2 }
 0x28e   : > { %v584_v4 = vpop.permute.xlu1 %583  ;;  %v578_v55 = vpop.permute.xlu0 %577 }
 0x28f   : > { %v667_v49 = vmul.f32 %v584_v4, %v1126_v0  ;;  %v668_v47 = vmul.f32 %v584_v4, %v1129_v1  ;;  %v665_v54 = vmul.f32 %v578_v55, %v1140_v5  ;;  %v666_v25 = vmul.f32 %v578_v55, %v1143_v6 }
 0x291   : > { %699 = vst [vmem:[%s1463_s7 + $0x20] sm:$0xff] %v667_v49 }
 0x292   : > { %700 = vst [vmem:[%s1463_s7 + $0x28] sm:$0xff] %v668_v47 }
 0x293   : > { %697 = vst [vmem:[%s1463_s7 + $0x10] sm:$0xff] %v665_v54 }
 0x294   : > { %698 = vst [vmem:[%s1463_s7 + $0x18] sm:$0xff] %v666_v25 }
 0x297   : > { %v596_v9 = vpop.permute.xlu2 %595 }
 0x298   : > { %v671_v10 = vmul.f32 %v596_v9, %v1162_v14  ;;  %v672_v17 = vmul.f32 %v596_v9, %v1165_v15 }
 0x29a   : > { %703 = vst [vmem:[%s1463_s7 + $0x40] sm:$0xff] %v671_v10 }
 0x29b   : > { %704 = vst [vmem:[%s1463_s7 + $0x48] sm:$0xff] %v672_v17 }
 0x29e   : > { %v602_v0 = vpop.permute.xlu1 %601  ;;  %v620_v1 = vpop.permute.xlu0 %619 }
 0x29f   : > { %v673_v5 = vmul.f32 %v602_v0, %v1174_v19  ;;  %v674_v6 = vmul.f32 %v602_v0, %v1177_v20  ;;  %v679_v44 = vmul.f32 %v620_v1, %v1204_v31  ;;  %v680_v60 = vmul.f32 %v620_v1, %v1207_v32 }
 0x2a1   : > { %705 = vst [vmem:[%s1463_s7 + $0x50] sm:$0xff] %v673_v5 }
 0x2a2   : > { %706 = vst [vmem:[%s1463_s7 + $0x58] sm:$0xff] %v674_v6 }
 0x2a3   : > { %711 = vst [vmem:[%s1463_s7 + $0x80] sm:$0xff] %v679_v44 }
 0x2a4   : > { %712 = vst [vmem:[%s1463_s7 + $0x88] sm:$0xff] %v680_v60 }
 0x2a7   : > { %v608_v14 = vpop.permute.xlu2 %607 }
 0x2a8   : > { %v675_v15 = vmul.f32 %v608_v14, %v1180_v21  ;;  %v676_v61 = vmul.f32 %v608_v14, %v1183_v22 }
 0x2aa   : > { %707 = vst [vmem:[%s1463_s7 + $0x60] sm:$0xff] %v675_v15 }
 0x2ab   : > { %708 = vst [vmem:[%s1463_s7 + $0x68] sm:$0xff] %v676_v61 }
 0x2ae   : > { %v614_v19 = vpop.permute.xlu1 %613  ;;  %v650_v20 = vpop.permute.xlu0 %649 }
 0x2af   : > { %v677_v31 = vmul.f32 %v614_v19, %v1192_v26  ;;  %v678_v32 = vmul.f32 %v614_v19, %v1195_v27  ;;  %v689_v42 = vmul.f32 %v650_v20, %v1252_v50  ;;  %v690_v11 = vmul.f32 %v650_v20, %v1255_v51 }
 0x2b1   : > { %709 = vst [vmem:[%s1463_s7 + $0x70] sm:$0xff] %v677_v31 }
 0x2b2   : > { %710 = vst [vmem:[%s1463_s7 + $0x78] sm:$0xff] %v678_v32 }
 0x2b3   : > { %721 = vst [vmem:[%s1463_s7 + $0xd0] sm:$0xff] %v689_v42 }
 0x2b4   : > { %722 = vst [vmem:[%s1463_s7 + $0xd8] sm:$0xff] %v690_v11 }
 0x2b7   : > { %v626_v21 = vpop.permute.xlu2 %625 }
 0x2b8   : > { %v681_v22 = vmul.f32 %v626_v21, %v1210_v33  ;;  %v682_v40 = vmul.f32 %v626_v21, %v1213_v34  ;;  %v1589_v33 = vld [vmem:[#allocation9_spill] sm:$0xff] }
 0x2ba   : > { %713 = vst [vmem:[%s1463_s7 + $0x90] sm:$0xff] %v681_v22 }
 0x2bb   : > { %714 = vst [vmem:[%s1463_s7 + $0x98] sm:$0xff] %v682_v40 }
 0x2be   : > { %v632_v26 = vpop.permute.xlu1 %631 }
 0x2bf   : > { %v683_v27 = vmul.f32 %v632_v26, %v1222_v38  ;;  %v684_v50 = vmul.f32 %v632_v26, %v1225_v39  ;;  %v1592_v39 = vld [vmem:[#allocation12_spill] sm:$0xff] }
 0x2c1   : > { %715 = vst [vmem:[%s1463_s7 + $0xa0] sm:$0xff] %v683_v27 }
 0x2c2   : > { %716 = vst [vmem:[%s1463_s7 + $0xa8] sm:$0xff] %v684_v50 }
 0x2c7   : > { %v638_v51 = vpop.permute.xlu2 %637 }
 0x2c8   : > { %v685_v12 = vmul.f32 %v638_v51, %v1588_v56  ;;  %v686_v34 = vmul.f32 %v638_v51, %v1589_v33 }
 0x2ca   : > { %717 = vst [vmem:[%s1463_s7 + $0xb0] sm:$0xff] %v685_v12 }
 0x2cb   : > { %718 = vst [vmem:[%s1463_s7 + $0xb8] sm:$0xff] %v686_v34 }
 0x2ce   : > { %v644_v13 = vpop.permute.xlu1 %643 }
 0x2cf   : > { %v687_v30 = vmul.f32 %v644_v13, %v1590_v53  ;;  %v688_v28 = vmul.f32 %v644_v13, %v1591_v35 }
 0x2d1   : > { %719 = vst [vmem:[%s1463_s7 + $0xc0] sm:$0xff] %v687_v30 }
 0x2d2   : > { %720 = vst [vmem:[%s1463_s7 + $0xc8] sm:$0xff] %v688_v28 }
 0x2d7   : > { %v656_v38 = vpop.permute.xlu2 %655 }
 0x2d8   : > { %v691_v59 = vmul.f32 %v656_v38, %v1592_v39  ;;  %v692_v43 = vmul.f32 %v656_v38, %v1593_v48 }
 0x2da   : > { %723 = vst [vmem:[%s1463_s7 + $0xe0] sm:$0xff] %v691_v59 }
 0x2db   : > { %724 = vst [vmem:[%s1463_s7 + $0xe8] sm:$0xff] %v692_v43 }
 0x2de   : > { %v662_v52 = vpop.permute.xlu1 %661 }
 0x2df   : > { %v693_v37 = vmul.f32 %v662_v52, %v1594_v62  ;;  %v694_v3 = vmul.f32 %v662_v52, %v1595_v8 }
 0x2e1   : > { %725 = vst [vmem:[%s1463_s7 + $0xf0] sm:$0xff] %v693_v37 }
 0x2e2   : > { %726 = vst [vmem:[%s1463_s7 + $0xf8] sm:$0xff] %v694_v3 }
 0x2e3   : > { %962 = shalt.err (!%p959_p4)
}
 0x2e4   : > { %s1005_s29 = smov 256   ;;  %s1006_s6 = smov 16  }
 0x2e5   : > { %836 = dma.vmem_to_hbm [thread:$0]  (%p1077_p11), %s741_s11, 4096, %s743_s17, %s728_s16, %s1005_s29, %s1005_s29, %s1006_s6  }
 0x2e6 PF: > { %s757_s23 = sand.u32 1, %s989_s12   ;;  %p1596_p7 = scmp.ge.s32.totalorder %s1001_s15, 2 }
 0x2e7   : > { %s758_s5 = scalar_lea.sflag [#allocation4], %s757_s23 }
 0x2e8   : > { %p843_p5 = pnand %p1596_p7, %p1081_p12 }
 0x2ea   : > { %p844_p8 = pneg %p843_p5 }
 0x2ec   : > { %984 = dma.done.wait (%p844_p8), %s758_s5, 4096  }
 0x2ed   : > { %986 = vsyncadd (%p844_p8), %s758_s5, 4294963200  ;;  %p16_p10 = scmp.ge.s32.totalorder %s1052_s18, 4   ;;  %s1597_s12 = smov %s993_s13 }
 0x2ee   : > { %s1598_s13 = smov %s997_s14  ;;  %s1599_s14 = smov %s1064_s21 }
 0x2ef   : > { %s1600_s15 = smov %s1052_s18  ;;  %18 = sbr.rel (!%p16_p10) target bundleno = 5 (0x5), region = 77 }
 0x2f4   :  { %764 = vsyncpa [#allocation3], 1 }
 0x2f5   :  { %766 = vsyncpa [#allocation3 + $0x1], 1 }
 0x2f6   :  { %767 = vsyncpa [#allocation4], 1 }
 0x2f7   :  { %769 = vsyncpa [#allocation4 + $0x1], 1 }

</bundles_post_ra>
